<compile_context>
chip_gen: v6e
topology: v6e:2x2x1
jax: 0.10.0
libtpu: 0.0.40
codegen_flags: <defaults>
</compile_context>

<pallas_src>
import functools
import math

import jax
import jax.numpy as jnp
from jax.experimental import pallas as pl
from jax.experimental.pallas import tpu as pltpu


def _round_up(x, m):
    return ((x + m - 1) // m) * m


def _mel_sq_err_kernel(mel_out_ref, mel_post_ref, mel_tgt_ref, out_ref, *,
                       rows, cols, tile_m, tile_t, need_mask):
    """Per row-block partial sum of (mel_out-tgt)^2 + (mel_post-tgt)^2."""
    tgt = mel_tgt_ref[...].astype(jnp.float32)
    d1 = mel_out_ref[...].astype(jnp.float32) - tgt
    d2 = mel_post_ref[...].astype(jnp.float32) - tgt
    sq = d1 * d1 + d2 * d2

    if need_mask:
        # Inputs are NOT padded in HBM: the tail block's out-of-bounds region
        # is undefined garbage (possibly NaN/Inf), so select (not multiply) it
        # away before accumulating.
        i = pl.program_id(0)
        row_idx = (i * tile_m
                   + jax.lax.broadcasted_iota(jnp.int32, (tile_m, tile_t), 0))
        col_idx = jax.lax.broadcasted_iota(jnp.int32, (tile_m, tile_t), 1)
        sq = jnp.where(jnp.logical_and(row_idx < rows, col_idx < cols),
                       sq, 0.0)

    # VPU tree-fold to a lane/sublane-dense (8, 128) partial: both reshapes
    # split exactly along (8, 128) vreg boundaries, and the sums are pure
    # across-vreg elementwise adds -- no XLU scalar reduction in the hot loop.
    p = jnp.sum(sq.reshape(tile_m // 8, 8, tile_t), axis=0)            # (8, tile_t)
    out_ref[...] = jnp.sum(p.reshape(8, tile_t // 128, 128), axis=1)   # (8, 128)


def tacotron2_loss(model_output, targets, *, target_block_bytes=2 * 1024 * 1024):
    """JAX/Pallas equivalent of Tacotron2Loss.forward.

    model_output: (mel_out, mel_out_postnet, gate_out, _)
    targets:      (mel_target, gate_target)
    Returns a scalar f32 loss.
    """
    mel_target, gate_target = targets[0], targets[1]
    mel_out, mel_out_postnet, gate_out = (model_output[0], model_output[1],
                                          model_output[2])

    T = mel_out.shape[-1]
    rows = math.prod(mel_out.shape[:-1])
    n_mel = rows * T

    # Free reshapes (no HBM copies): stream the raw, unpadded model outputs.
    mo = jnp.reshape(mel_out, (rows, T))
    mp = jnp.reshape(mel_out_postnet, (rows, T))
    mt = jnp.reshape(mel_target, (rows, T))

    # Whole time axis per block -> 1-D grid over row blocks.
    tile_t = _round_up(T, 128)
    itemsize = jnp.dtype(mo.dtype).itemsize
    # ~2 MiB blocks: 3 inputs x 2 pipeline buffers x 2 MiB + outputs stays far
    # below v7x's 64 MiB VMEM (and the 48 MiB scoped limit set below).
    tile_m = max(16, (target_block_bytes // (tile_t * itemsize)) // 16 * 16)
    tile_m = min(tile_m, _round_up(rows, 16))
    num_blocks = pl.cdiv(rows, tile_m)
    # TODO(synk): if T is so large that even a 16-row block blows the VMEM
    # budget, also tile the time axis (2-D grid); not needed for Tacotron2.

    need_mask = (tile_t != T) or (rows % tile_m != 0)

    kernel = functools.partial(_mel_sq_err_kernel, rows=rows, cols=T,
                               tile_m=tile_m, tile_t=tile_t,
                               need_mask=need_mask)

    bytes_accessed = int(3 * rows * T * itemsize + num_blocks * 8 * 128 * 4)
    cost = pl.CostEstimate(flops=int(7 * n_mel), transcendentals=0,
                           bytes_accessed=bytes_accessed)

    partials = pl.pallas_call(
        kernel,
        out_shape=jax.ShapeDtypeStruct((num_blocks * 8, 128), jnp.float32),
        grid=(num_blocks,),
        in_specs=[pl.BlockSpec((tile_m, tile_t), lambda i: (i, 0)),
                  pl.BlockSpec((tile_m, tile_t), lambda i: (i, 0)),
                  pl.BlockSpec((tile_m, tile_t), lambda i: (i, 0))],
        # Each grid step owns its own output block -> safe under "parallel"
        # (both TensorCores on v7x), no shared scratch, no epilogue.
        out_specs=pl.BlockSpec((8, 128), lambda i: (i, 0)),
        compiler_params=pltpu.CompilerParams(
            dimension_semantics=("parallel",),
            vmem_limit_bytes=48 * 1024 * 1024,
        ),
        cost_estimate=cost,
    )(mo, mp, mt)

    # mel_loss = MSE(mel_out, tgt) + MSE(mel_post, tgt); both means share n_mel.
    mel_loss = jnp.sum(partials) * jnp.float32(1.0 / n_mel)

    # Gate BCE-with-logits: O(B*T) elements -- negligible, done in plain XLA
    # (per perf review) instead of pinning resident gate blocks in the kernel.
    x = jnp.reshape(gate_out, (-1,)).astype(jnp.float32)
    y = jnp.reshape(gate_target, (-1,)).astype(jnp.float32)
    gate_loss = jnp.mean(jnp.maximum(x, 0.0) - x * y
                         + jnp.log1p(jnp.exp(-jnp.abs(x))))

    return mel_loss + gate_loss


def _reference_loss(model_output, targets):
    mel_target, gate_target = targets[0], targets[1]
    mel_out, mel_out_postnet, gate_out = (model_output[0], model_output[1],
                                          model_output[2])
    mel_loss = jnp.mean((mel_out - mel_target) ** 2) + jnp.mean(
        (mel_out_postnet - mel_target) ** 2)
    x = jnp.reshape(gate_out, (-1,)).astype(jnp.float32)
    y = jnp.reshape(gate_target, (-1,)).astype(jnp.float32)
    bce = jnp.maximum(x, 0.0) - x * y + jnp.log1p(jnp.exp(-jnp.abs(x)))
    return mel_loss + jnp.mean(bce)


if __name__ == "__main__":
    key = jax.random.PRNGKey(0)
    k1, k2, k3, k4, k5 = jax.random.split(key, 5)

    B, N_MEL, T = 2, 8, 16  # small shapes consistent with (B, n_mel, T)

    mel_out = jax.random.normal(k1, (B, N_MEL, T), dtype=jnp.float32)
    mel_out_postnet = jax.random.normal(k2, (B, N_MEL, T), dtype=jnp.float32)
    mel_target = jax.random.normal(k3, (B, N_MEL, T), dtype=jnp.float32)
    gate_out = jax.random.normal(k4, (B, T), dtype=jnp.float32)
    gate_target = (jax.random.uniform(k5, (B, T)) > 0.5).astype(jnp.float32)

    model_output = (mel_out, mel_out_postnet, gate_out, None)
    targets = (mel_target, gate_target)

    loss = tacotron2_loss(model_output, targets)
    loss = jax.block_until_ready(loss)

    ref = _reference_loss(model_output, targets)
    assert jnp.allclose(loss, ref, rtol=1e-5, atol=1e-5), (loss, ref)

    print("KERNEL_OK")
</pallas_src>

<mosaic_0001>
module attributes {stable_mosaic.version = 11 : i64} {
  func.func @_mel_sq_err_kernel(%arg0: i32, %arg1: memref<16x128xf32, #tpu.memory_space<vmem>>, %arg2: memref<16x128xf32, #tpu.memory_space<vmem>>, %arg3: memref<16x128xf32, #tpu.memory_space<vmem>>, %arg4: memref<8x128xf32, #tpu.memory_space<vmem>>) attributes {dimension_semantics = [#tpu.dimension_semantics<parallel>], iteration_bounds = array<i64: 1>, scalar_prefetch = 0 : i64, scratch_operands = 0 : i64, tpu.core_type = #tpu.core_type<tc>, window_params = [{transform_indices = @transform_0, window_bounds = array<i64: 16, 128>}, {transform_indices = @transform_1, window_bounds = array<i64: 16, 128>}, {transform_indices = @transform_2, window_bounds = array<i64: 16, 128>}, {transform_indices = @transform_3, window_bounds = array<i64: 8, 128>}]} {
    %c0 = arith.constant 0 : index
    %c0_0 = arith.constant 0 : index
    %0 = vector.load %arg3[%c0, %c0_0] : memref<16x128xf32, #tpu.memory_space<vmem>>, vector<16x128xf32>
    %c0_1 = arith.constant 0 : index
    %c0_2 = arith.constant 0 : index
    %1 = vector.load %arg1[%c0_1, %c0_2] : memref<16x128xf32, #tpu.memory_space<vmem>>, vector<16x128xf32>
    %2 = arith.subf %1, %0 : vector<16x128xf32>
    %c0_3 = arith.constant 0 : index
    %c0_4 = arith.constant 0 : index
    %3 = vector.load %arg2[%c0_3, %c0_4] : memref<16x128xf32, #tpu.memory_space<vmem>>, vector<16x128xf32>
    %4 = arith.subf %3, %0 : vector<16x128xf32>
    %5 = arith.mulf %2, %2 : vector<16x128xf32>
    %6 = arith.mulf %4, %4 : vector<16x128xf32>
    %7 = arith.addf %5, %6 : vector<16x128xf32>
    %c16_i32 = arith.constant 16 : i32
    %8 = arith.muli %arg0, %c16_i32 : i32
    %9 = tpu.iota {dimensions = array<i32: 0>} : vector<16x128xi32>
    %10 = vector.broadcast %8 : i32 to vector<16x128xi32>
    %11 = arith.addi %10, %9 : vector<16x128xi32>
    %12 = tpu.iota {dimensions = array<i32: 1>} : vector<16x128xi32>
    %c16_i32_5 = arith.constant 16 : i32
    %13 = vector.broadcast %c16_i32_5 : i32 to vector<16x128xi32>
    %14 = arith.cmpi slt, %11, %13 : vector<16x128xi32>
    %c16_i32_6 = arith.constant 16 : i32
    %15 = vector.broadcast %c16_i32_6 : i32 to vector<16x128xi32>
    %16 = arith.cmpi slt, %12, %15 : vector<16x128xi32>
    %17 = arith.andi %14, %16 : vector<16x128xi1>
    %cst = arith.constant 0.000000e+00 : f32
    %18 = vector.broadcast %cst : f32 to vector<16x128xf32>
    %19 = arith.select %17, %7, %18 : vector<16x128xi1>, vector<16x128xf32>
    %20 = vector.shape_cast %19 : vector<16x128xf32> to vector<2x8x128xf32>
    %cst_7 = arith.constant dense<0.000000e+00> : vector<8x128xf32>
    %21 = vector.multi_reduction <add>, %20, %cst_7 [0] : vector<2x8x128xf32> to vector<8x128xf32>
    %22 = vector.shape_cast %21 : vector<8x128xf32> to vector<8x1x128xf32>
    %cst_8 = arith.constant dense<0.000000e+00> : vector<8x128xf32>
    %23 = vector.multi_reduction <add>, %22, %cst_8 [1] : vector<8x1x128xf32> to vector<8x128xf32>
    %c0_9 = arith.constant 0 : index
    %c0_10 = arith.constant 0 : index
    %24 = vector.load %arg4[%c0_9, %c0_10] : memref<8x128xf32, #tpu.memory_space<vmem>>, vector<8x128xf32>
    tpu.vector_store %arg4[%c0_9, %c0_10], %23 {strides = array<i32>} : memref<8x128xf32, #tpu.memory_space<vmem>>, vector<8x128xf32>,
    return
  }
  func.func @transform_0(%arg0: i32) -> (i32, i32) {
    %c0_i32 = arith.constant 0 : i32
    %c0_i32_0 = arith.constant 0 : i32
    return %arg0, %c0_i32 : i32, i32
  }
  func.func @transform_1(%arg0: i32) -> (i32, i32) {
    %c0_i32 = arith.constant 0 : i32
    %c0_i32_0 = arith.constant 0 : i32
    return %arg0, %c0_i32 : i32, i32
  }
  func.func @transform_2(%arg0: i32) -> (i32, i32) {
    %c0_i32 = arith.constant 0 : i32
    %c0_i32_0 = arith.constant 0 : i32
    return %arg0, %c0_i32 : i32, i32
  }
  func.func @transform_3(%arg0: i32) -> (i32, i32) {
    %c0_i32 = arith.constant 0 : i32
    %c0_i32_0 = arith.constant 0 : i32
    return %arg0, %c0_i32 : i32, i32
  }
}

</mosaic_0001>

<bundles_post_ra>
// kernel: tpu_custom_call.1
= control target key start
LH: loop header
LB: loop body
LE: loop exit
PB: predicated region body
PF: predicated region fallthrough
CT: control target
= control target key end

     0   :  { %8 = vsyncpa [#allocation3], 0  ;;  %s237_s0 = inlined_call_operand.hbm [shape: f32[16,16], index: 0, kind: input, shape index: {}]   ;;  %s238_s1 = inlined_call_operand.hbm [shape: f32[16,16], index: 1, kind: input, shape index: {}]   ;;  %s239_s2 = inlined_call_operand.hbm [shape: f32[16,16], index: 2, kind: input, shape index: {}]   ;;  %s240_s3 = inlined_call_operand.hbm [shape: f32[8,128], index: 3, kind: output, shape index: {}]  }
   0x1   :  { %9 = vsyncpa [#allocation6], 0 }
   0x2   :  { %10 = vsyncpa [#allocation4], 0  ;;  %s199_s12 = smov [#allocation5]   ;;  %s200_s14 = smov [#allocation2]  }
   0x3   :  { %s28_s13 = sshll.u32 %s199_s12, 4  ;;  %s16_s15 = sshll.u32 %s200_s14, 4  ;;  %s29_s13 = int_to_ptr.vmem [resolvable:$true] %s28_s13  ;;  %s17_s15 = int_to_ptr.vmem [resolvable:$true] %s16_s15 }
   0x4   :  { %s121_s16 = scalar_lea.vmem %s29_s13, 256  ;;  %p126_p1 = scmp.lt.s32.totalorder %s29_s13, %s29_s13 }
   0x5   :  { %p122_p0 = scmp.ne.s32.totalorder %s29_s13, %s121_s16  ;;  %p127_p2 = scmp.lt.s32.totalorder %s121_s16, %s121_s16 }
   0x7   :  { %p128_p3 = por %p127_p2, %p126_p1 }
   0x9   :  { %p129_p4 = pnand %p128_p3, %p122_p0 }
   0xb   :  { %132 = shalt.err (!%p129_p4)
}
   0xc   :  { %s201_s17 = smov 128   ;;  %s202_s18 = smov 8  }
   0xd   :  { %34 = dma.hbm_to_vmem [thread:$0]  %s238_s1, 256, %s29_s13, [#allocation6], %s201_s17, %s201_s17, %s202_s18  }
   0xe   :  { %s141_s21 = scalar_lea.vmem %s17_s15, 256  ;;  %p146_p6 = scmp.lt.s32.totalorder %s17_s15, %s17_s15 }
   0xf   :  { %p142_p5 = scmp.ne.s32.totalorder %s17_s15, %s141_s21  ;;  %p147_p7 = scmp.lt.s32.totalorder %s141_s21, %s141_s21 }
  0x11   :  { %p148_p8 = por %p147_p7, %p146_p6 }
  0x13   :  { %p149_p9 = pnand %p148_p8, %p142_p5 }
  0x15   :  { %152 = shalt.err (!%p149_p9)
}
  0x16   :  { %22 = dma.hbm_to_vmem [thread:$0]  %s237_s0, 256, %s17_s15, [#allocation3], %s201_s17, %s201_s17, %s202_s18  }
  0x17   :  { %s203_s24 = smov [#allocation7]  }
  0x18   :  { %s40_s25 = sshll.u32 %s203_s24, 4  ;;  %s41_s25 = int_to_ptr.vmem [resolvable:$true] %s40_s25 }
  0x19   :  { %s161_s26 = scalar_lea.vmem %s41_s25, 256  ;;  %p166_p11 = scmp.lt.s32.totalorder %s41_s25, %s41_s25 }
  0x1a   :  { %p162_p10 = scmp.ne.s32.totalorder %s41_s25, %s161_s26  ;;  %p167_p12 = scmp.lt.s32.totalorder %s161_s26, %s161_s26 }
  0x1c   :  { %p168_p13 = por %p167_p12, %p166_p11 }
  0x1e   :  { %p169_p0 = pnand %p168_p13, %p162_p10 }
  0x20   :  { %172 = shalt.err (!%p169_p0)
}
  0x21   :  { %46 = dma.hbm_to_vmem [thread:$0]  %s239_s2, 256, %s41_s25, [#allocation6], %s201_s17, %s201_s17, %s202_s18  }
  0x22   :  { %193 = dma.done.wait [#allocation3], 256  }
  0x23   :  { %194 = vsyncadd [#allocation3], 4294967040 }
  0x24   :  { %195 = dma.done.wait [#allocation6], 512  }
  0x25   :  { %196 = vsyncadd [#allocation6], 4294966784  ;;  %v79_v0 = vlaneseq  ;;  %v56_v1 = vld [vmem:[#allocation7] sm:$0xff]  ;;  %v57_v2 = vld [vmem:[#allocation7 + $0x8] sm:$0xff]  ;;  %s204_s0 = smov [#allocation8]  }
  0x26   :  { %v58_v3 = vld [vmem:[#allocation2] sm:$0xff]  ;;  %v59_v4 = vld [vmem:[#allocation2 + $0x8] sm:$0xff]  ;;  %v62_v6 = vld [vmem:[#allocation5] sm:$0xff]  ;;  %s97_s2 = sshll.u32 %s204_s0, 4  ;;  %s98_s2 = int_to_ptr.vmem [resolvable:$true] %s97_s2 }
  0x27   :  { %v60_v5 = vsub.f32 %v58_v3, %v56_v1  ;;  %v63_v7 = vld [vmem:[#allocation5 + $0x8] sm:$0xff]  ;;  %v80_v8 = vand.u32 127, %v79_v0  ;;  %v61_v9 = vsub.f32 %v59_v4, %v57_v2  ;;  %v64_v10 = vsub.f32 %v62_v6, %v56_v1  ;;  %s173_s28 = scalar_lea.vmem %s98_s2, 128  ;;  %p178_p2 = scmp.lt.s32.totalorder %s98_s2, %s98_s2 }
  0x28   :  { %v65_v11 = vsub.f32 %v63_v7, %v57_v2  ;;  %p174_p1 = scmp.ne.s32.totalorder %s98_s2, %s173_s28  ;;  %p179_p3 = scmp.lt.s32.totalorder %s173_s28, %s173_s28 }
  0x29   :  { %v66_v12 = vmul.f32 %v60_v5, %v60_v5  ;;  %v67_v13 = vmul.f32 %v61_v9, %v61_v9  ;;  %v68_v14 = vmul.f32 %v64_v10, %v64_v10  ;;  %vm83_vm0 = vcmp.lt.s32.totalorder %v80_v8, 16 }
  0x2a   :  { %v69_v15 = vmul.f32 %v65_v11, %v65_v11  ;;  %p180_p4 = por %p179_p3, %p178_p2 }
  0x2b   :  { %v70_v16 = vadd.f32 %v68_v14, %v66_v12 }
  0x2c   :  { %v71_v17 = vadd.f32 %v69_v15, %v67_v13  ;;  %p181_p5 = pnand %p180_p4, %p174_p1 }
  0x2d   :  { %v86_v18 = vsel %vm83_vm0, %v70_v16, 0.0 }
  0x2e   :  { %v87_v19 = vsel %vm83_vm0, %v71_v17, 0.0 }
  0x2f   :  { %v88_v20 = vadd.f32 %v87_v19, %v86_v18 }
  0x31   :  { %90 = vst [vmem:[#allocation8] sm:$0xff] %v88_v20 }
  0x32   :  { %184 = shalt.err (!%p181_p5)
}
  0x33   :  { %100 = dma.vmem_to_hbm [thread:$0]  %s98_s2, 128, %s240_s3, [#allocation4]  }
  0x34   :  { %197 = dma.done.wait [#allocation4], 128  }
  0x35   :  { %198 = vsyncadd [#allocation4], 4294967168 }
  0x36   :  { %104 = vsyncpa [#allocation3], 1 }
  0x37   :  { %105 = vsyncpa [#allocation6], 1 }
  0x38   :  { %106 = vsyncpa [#allocation4], 1 }

</bundles_post_ra>
